<compile_context>
chip_gen: v5e
topology: v5e:2x2
jax: 0.10.0
libtpu: 0.0.40
codegen_flags: <defaults>
</compile_context>

<pallas_src>
import functools

import jax
import jax.numpy as jnp
from jax.experimental import pallas as pl
from jax.experimental.pallas import tpu as pltpu

_LANES = 128
_TILE_ROWS = 8192                    # 8192 * 128 * 4B = 4 MiB per f32 block
_TILE_FLAT = _TILE_ROWS * _LANES     # 1M elements for the rank-1 (unaligned) path
_MAX_SINGLE_BLOCK = _TILE_FLAT       # unaligned inputs up to 1M elems -> one whole-array block
_VMEM_LIMIT = 32 * 1024 * 1024       # 4 MiB in + 4 MiB out, double-buffered = 16 MiB << 32 MiB


def _apply_bins_kernel(x_ref, o_ref, *, bin_size: float):
    # Cast inside the kernel (free VPU work, saves an XLA cast pass over HBM
    # for non-f32 inputs). floor() already yields integer-valued floats, so
    # torch's round() is a no-op and is dropped.
    x = x_ref[...].astype(jnp.float32)
    o_ref[...] = (jnp.floor(x / bin_size) * bin_size).astype(o_ref.dtype)


def _cost(n: int, in_dtype, out_dtype) -> pl.CostEstimate:
    return pl.CostEstimate(
        flops=2 * n,
        transcendentals=n,  # divide-by-constant lowers to an EUP reciprocal + Newton steps
        bytes_accessed=n * (jnp.dtype(in_dtype).itemsize + jnp.dtype(out_dtype).itemsize),
    )


def _params() -> pltpu.CompilerParams:
    return pltpu.CompilerParams(
        # "parallel" lets v7x shard blocks across both TensorCores; no-op on v5e/v6e.
        dimension_semantics=("parallel",),
        vmem_limit_bytes=_VMEM_LIMIT,
    )


def apply_bins(x: jax.Array, bin_size: float, out_dtype=jnp.float32) -> jax.Array:
    """Pallas implementation of ApplyBins.forward.

    Default out_dtype=float32 matches torch's promotion with the float32
    bin_size buffer; pass out_dtype=x.dtype for a lower-bandwidth native path.
    """
    bin_size = float(bin_size)
    out_dtype = jnp.dtype(out_dtype)
    orig_shape = x.shape
    xf = x.reshape(-1)  # metadata-only for contiguous row-major inputs
    n = xf.shape[0]
    if n == 0:
        return jnp.zeros(orig_shape, out_dtype)

    kernel = functools.partial(_apply_bins_kernel, bin_size=bin_size)

    if n % _LANES == 0:
        # Fast path: zero-copy lane-dense (rows, 128) view, 4 MiB row blocks.
        # _TILE_ROWS is a multiple of 8/16/32, so the (sublane, 128) min-tile
        # constraint holds for f32/bf16/int8 inputs; a partial edge block
        # (rows % _TILE_ROWS != 0) is masked by Pallas.
        rows = n // _LANES
        x2d = xf.reshape(rows, _LANES)
        tile_rows = rows if rows <= _TILE_ROWS else _TILE_ROWS
        out2d = pl.pallas_call(
            kernel,
            out_shape=jax.ShapeDtypeStruct((rows, _LANES), out_dtype),
            grid=(pl.cdiv(rows, tile_rows),),
            in_specs=[pl.BlockSpec((tile_rows, _LANES), lambda i: (i, 0))],
            out_specs=pl.BlockSpec((tile_rows, _LANES), lambda i: (i, 0)),
            compiler_params=_params(),
            cost_estimate=_cost(n, x.dtype, out_dtype),
        )(x2d)
        return out2d.reshape(orig_shape)

    # Unaligned path: stream the flat rank-1 array directly — no jnp.pad and no
    # [:n] slice (each of those was a full extra HBM read+write pass outside the
    # kernel). Small inputs use a single whole-array block (block == full array,
    # so exempt from the 128-lane divisibility rule); larger ones use 128-aligned
    # blocks with a masked partial edge block.
    tile = n if n <= _MAX_SINGLE_BLOCK else _TILE_FLAT
    out1d = pl.pallas_call(
        kernel,
        out_shape=jax.ShapeDtypeStruct((n,), out_dtype),
        grid=(pl.cdiv(n, tile),),
        in_specs=[pl.BlockSpec((tile,), lambda i: (i,))],
        out_specs=pl.BlockSpec((tile,), lambda i: (i,)),
        compiler_params=_params(),
        cost_estimate=_cost(n, x.dtype, out_dtype),
    )(xf)
    return out1d.reshape(orig_shape)


def _ref(x, bin_size):
    x = x.astype(jnp.float32)
    return jnp.floor(x / bin_size) * bin_size


if __name__ == "__main__":
    key = jax.random.PRNGKey(0)
    bin_size = 3.0

    # 1) Primary case: small NCHW-style f32 tensor (lane-aligned, single block).
    x = jax.random.normal(key, (2, 4, 16, 16), dtype=jnp.float32) * 10.0
    out = jax.block_until_ready(apply_bins(x, bin_size))
    assert out.shape == x.shape and out.dtype == jnp.float32
    assert bool(jnp.allclose(out, _ref(x, bin_size), atol=1e-6)), "mismatch vs reference (f32)"

    # 2) bf16 input: exercises the in-kernel cast (no wrapper astype pass).
    x_bf16 = (jax.random.normal(key, (2, 4, 16, 16), dtype=jnp.float32) * 10.0).astype(jnp.bfloat16)
    out_bf = jax.block_until_ready(apply_bins(x_bf16, bin_size))
    assert out_bf.dtype == jnp.float32
    assert bool(jnp.allclose(out_bf, _ref(x_bf16, bin_size), atol=1e-6)), "mismatch (bf16 input)"

    # 2b) Native-dtype output path (halves store traffic when f32 promotion isn't needed).
    out_bf_native = jax.block_until_ready(apply_bins(x_bf16, bin_size, out_dtype=jnp.bfloat16))
    assert out_bf_native.dtype == jnp.bfloat16
    assert bool(jnp.allclose(out_bf_native.astype(jnp.float32),
                             _ref(x_bf16, bin_size).astype(jnp.bfloat16).astype(jnp.float32))), \
        "mismatch (bf16 output)"

    # 3) Unaligned case (flat size 1155): rank-1 whole-array block, no pad/slice copies.
    k1, k2 = jax.random.split(key)
    x_odd = jax.random.normal(k1, (3, 5, 7, 11), dtype=jnp.float32) * 7.0
    out_odd = jax.block_until_ready(apply_bins(x_odd, bin_size))
    assert out_odd.shape == x_odd.shape
    assert bool(jnp.allclose(out_odd, _ref(x_odd, bin_size), atol=1e-6)), "mismatch (unaligned)"

    # 4) Multi-block case: 8320 rows -> 2 grid steps (4 MiB block + partial edge block).
    x_big = jax.random.normal(k2, (8320, 128), dtype=jnp.float32) * 25.0
    out_big = jax.block_until_ready(apply_bins(x_big, bin_size))
    assert bool(jnp.allclose(out_big, _ref(x_big, bin_size), atol=1e-6)), "mismatch (multi-block)"

    print("KERNEL_OK")
</pallas_src>

<mosaic_0001>
module attributes {stable_mosaic.version = 11 : i64} {
  func.func @_apply_bins_kernel(%arg0: i32, %arg1: memref<16x128xf32, #tpu.memory_space<vmem>>, %arg2: memref<16x128xf32, #tpu.memory_space<vmem>>) attributes {dimension_semantics = [#tpu.dimension_semantics<parallel>], iteration_bounds = array<i64: 1>, scalar_prefetch = 0 : i64, scratch_operands = 0 : i64, tpu.core_type = #tpu.core_type<tc>, window_params = [{transform_indices = @transform_0, window_bounds = array<i64: 16, 128>}, {transform_indices = @transform_1, window_bounds = array<i64: 16, 128>}]} {
    %c0 = arith.constant 0 : index
    %c0_0 = arith.constant 0 : index
    %0 = vector.load %arg1[%c0, %c0_0] : memref<16x128xf32, #tpu.memory_space<vmem>>, vector<16x128xf32>
    %cst = arith.constant 3.000000e+00 : f32
    %1 = vector.broadcast %cst : f32 to vector<16x128xf32>
    %2 = arith.divf %0, %1 : vector<16x128xf32>
    %3 = math.floor %2 : vector<16x128xf32>
    %cst_1 = arith.constant 3.000000e+00 : f32
    %4 = vector.broadcast %cst_1 : f32 to vector<16x128xf32>
    %5 = arith.mulf %3, %4 : vector<16x128xf32>
    %c0_2 = arith.constant 0 : index
    %c0_3 = arith.constant 0 : index
    %6 = vector.load %arg2[%c0_2, %c0_3] : memref<16x128xf32, #tpu.memory_space<vmem>>, vector<16x128xf32>
    tpu.vector_store %arg2[%c0_2, %c0_3], %5 {strides = array<i32>} : memref<16x128xf32, #tpu.memory_space<vmem>>, vector<16x128xf32>,
    return
  }
  func.func @transform_0(%arg0: i32) -> (i32, i32) {
    %c0_i32 = arith.constant 0 : i32
    %c0_i32_0 = arith.constant 0 : i32
    return %arg0, %c0_i32 : i32, i32
  }
  func.func @transform_1(%arg0: i32) -> (i32, i32) {
    %c0_i32 = arith.constant 0 : i32
    %c0_i32_0 = arith.constant 0 : i32
    return %arg0, %c0_i32 : i32, i32
  }
}

</mosaic_0001>

<bundles_post_ra>
// kernel: tpu_custom_call.1
= control target key start
LH: loop header
LB: loop body
LE: loop exit
PB: predicated region body
PF: predicated region fallthrough
CT: control target
= control target key end

     0   :  { %6 = vsyncpa [#allocation3], 0  ;;  %s147_s0 = inlined_call_operand.hbm [shape: f32[16,128], index: 0, kind: input, shape index: {}]   ;;  %s148_s1 = inlined_call_operand.hbm [shape: f32[16,128], index: 1, kind: output, shape index: {}]  }
   0x1   :  { %7 = vsyncpa [#allocation4], 0  ;;  %s12_s8 = sshll.u32 %s147_s0, 4  ;;  %s120_s9 = smov [#allocation2]   ;;  %s13_s8 = int_to_ptr.hbm [resolvable:$true] %s12_s8 }
   0x2   :  { %s14_s10 = sshll.u32 %s120_s9, 4  ;;  %s121_s11 = smov 128   ;;  %s15_s10 = int_to_ptr.vmem [resolvable:$true] %s14_s10 }
   0x3   :  { %s122_s12 = smov 8  }
   0x4   :  { %20 = dma.hbm_to_vmem [thread:$0]  %s13_s8, 256, %s15_s10, [#allocation3], %s121_s11, %s121_s11, %s122_s12  }
   0x5   :  { %116 = dma.done.wait [#allocation3], 256  }
   0x6   :  { %117 = vsyncadd [#allocation3], 4294967040  ;;  %v123_v0 = vmov 3.0   ;;  %v25_v5 = vld [vmem:[#allocation2] sm:$0xff]  ;;  %v26_v7 = vld [vmem:[#allocation2 + $0x8] sm:$0xff]  ;;  %s124_s0 = smov [#allocation5]  }
   0x7   :  { %66 = vrcp.f32 %v123_v0  ;;  %s46_s13 = sshll.u32 %s124_s0, 4  ;;  %s48_s16 = sshll.u32 %s148_s1, 4  ;;  %s47_s13 = int_to_ptr.vmem [resolvable:$true] %s46_s13  ;;  %s49_s16 = int_to_ptr.hbm [resolvable:$true] %s48_s16 }
   0xd   :  { %v67_v1 = vpop.eup %66 }
   0xe   :  { %v28_v2 = vmul.f32 3.0, %v67_v1  ;;  %vm32_vm0 = vweird.f32 %v67_v1 }
  0x10   :  { %v29_v3 = vsub.f32 1.0, %v28_v2 }
  0x12   :  { %v30_v4 = vmul.f32 %v67_v1, %v29_v3 }
  0x14   :  { %v31_v6 = vadd.f32 %v67_v1, %v30_v4 }
  0x16   :  { %v33_v8 = vsel %vm32_vm0, %v67_v1, %v31_v6 }
  0x17   :  { %v34_v9 = vmul.f32 %v33_v8, %v25_v5  ;;  %v35_v10 = vmul.f32 %v33_v8, %v26_v7 }
  0x19   :  { %v36_v11 = vfloor.f32 %v34_v9  ;;  %v37_v12 = vfloor.f32 %v35_v10 }
  0x1b   :  { %v38_v13 = vmul.f32 3.0, %v36_v11  ;;  %v39_v14 = vmul.f32 3.0, %v37_v12 }
  0x1d   :  { %40 = vst [vmem:[#allocation5] sm:$0xff] %v38_v13 }
  0x1e   :  { %41 = vst [vmem:[#allocation5 + $0x8] sm:$0xff] %v39_v14 }
  0x1f   :  { %54 = dma.vmem_to_hbm [thread:$0]  %s47_s13, 256, %s49_s16, [#allocation4], %s121_s11, %s121_s11, %s122_s12  }
  0x20   :  { %118 = dma.done.wait [#allocation4], 256  }
  0x21   :  { %119 = vsyncadd [#allocation4], 4294967040 }
  0x22   :  { %59 = vsyncpa [#allocation3], 1 }
  0x23   :  { %60 = vsyncpa [#allocation4], 1 }

</bundles_post_ra>
